<compile_context>
chip_gen: v7x
topology: tpu7x:2x2x1
jax: 0.10.0
libtpu: 0.0.40
codegen_flags: <defaults>
</compile_context>

<pallas_src>
import functools
import math

import jax
import jax.numpy as jnp
from jax import lax
from jax.experimental import pallas as pl
from jax.experimental.pallas import tpu as pltpu


def _spa_kernel(gamma_ref, q_ref, kv_ref, o_ref,
                qbf_sc, m_sc, l_sc, acc_sc,
                *, tile_k, n_valid, mask_keys):
    """One (batch, query-tile, key-tile) grid step.

    gamma_ref: (1,) f32 SMEM        -- learned residual scale.
    q_ref:     (1, C, TQ) f32 VMEM  -- query columns (also the residual input).
    kv_ref:    (1, C, TK) bf16 VMEM -- key / value columns (bf16-streamed).
    o_ref:     (1, C, TQ) VMEM      -- output tile, resident across the key axis.
    qbf_sc:    (C, TQ) bf16         -- q bf16 cast, hoisted out of the key loop.
    m_sc/l_sc: (1, TQ) f32          -- running max / softmax denominator.
    acc_sc:    (C, TQ) f32          -- running weighted-value accumulator.
    """
    ki = pl.program_id(2)

    @pl.when(ki == 0)
    def _init():
        qbf_sc[...] = q_ref[0].astype(jnp.bfloat16)       # cast once per q tile
        m_sc[...] = jnp.full_like(m_sc, -jnp.inf)
        l_sc[...] = jnp.zeros_like(l_sc)
        acc_sc[...] = jnp.zeros_like(acc_sc)

    q_bf = qbf_sc[...]                                    # (C, TQ) bf16
    kv_bf = kv_ref[0]                                     # (C, TK) bf16

    # Transposed score tile: s_t[j, i] = sum_c kv[c, j] * q[c, i]  -> (TK, TQ).
    # Contract over C on both operands: no N x N transpose anywhere, and the
    # query axis stays on lanes so m/l/acc are lane-dense even for small C.
    s_t = lax.dot_general(
        kv_bf, q_bf,
        dimension_numbers=(((0,), (0,)), ((), ())),
        preferred_element_type=jnp.float32)

    if mask_keys:
        # Keys padded up to the tile multiple get -inf energy (exact no-op in
        # the softmax). Only emitted when padding actually exists.
        key_idx = lax.broadcasted_iota(jnp.int32, s_t.shape, 0) + ki * tile_k
        s_t = jnp.where(key_idx < n_valid, s_t, -jnp.inf)

    # Online-softmax update; all elementwise math stays in f32 (mandatory on
    # v5e, which has no bf16 VPU/EUP).
    m_prev = m_sc[...]                                               # (1, TQ)
    m_new = jnp.maximum(m_prev, jnp.max(s_t, axis=0, keepdims=True))
    alpha = jnp.exp(m_prev - m_new)                                  # (1, TQ)
    p = jnp.exp(s_t - m_new)                                         # (TK, TQ)
    l_sc[...] = alpha * l_sc[...] + jnp.sum(p, axis=0, keepdims=True)

    # pv[c, i] = sum_j kv[c, j] * p[j, i] -> (C, TQ): a natural (M,K)x(K,N)
    # matmul whose output is already in the accumulator / output layout.
    pv = lax.dot_general(
        kv_bf, p.astype(jnp.bfloat16),
        dimension_numbers=(((1,), (0,)), ((), ())),
        preferred_element_type=jnp.float32)
    acc_sc[...] = alpha * acc_sc[...] + pv
    m_sc[...] = m_new

    @pl.when(ki == pl.num_programs(2) - 1)
    def _finalize():
        inv_l = pl.reciprocal(l_sc[...], approx=True)     # EUP vrcp, free slot
        gamma = gamma_ref[0]
        out = gamma * (acc_sc[...] * inv_l) + q_ref[0]    # fused residual
        o_ref[0] = out.astype(o_ref.dtype)


def _round_up(v, m):
    return ((v + m - 1) // m) * m


def spa_module_forward(x, gamma, *, tile_q=256, tile_k=512):
    """x: (B, C, H, W), gamma: (1,)  ->  gamma * spatial_attention(x) + x."""
    B, C, H, W = x.shape
    N = H * W
    xf = x.reshape(B, C, N)

    # Tile sizes: multiples of 128 (lane width). 256/512 amortize the per-step
    # grid overhead and fill the 256-wide MXU on v6e/v7x while staying well
    # under v7x's 64 MiB VMEM at the 32 MiB scoped limit.
    tq = min(tile_q, _round_up(N, 128))
    tk = min(tile_k, _round_up(N, 128))
    n_pad = _round_up(N, math.lcm(tq, tk))

    if n_pad != N:
        xf = jnp.pad(xf, ((0, 0), (0, 0), (0, n_pad - N)))

    # kv operand streamed in bf16: it is re-fetched n_pad/tq times per batch
    # (the dominant HBM traffic), so halving its width halves that traffic.
    kv_bf = xf.astype(jnp.bfloat16)

    grid = (B, n_pad // tq, n_pad // tk)

    itemsize = x.dtype.itemsize
    cost = pl.CostEstimate(
        flops=4 * B * n_pad * n_pad * C,        # two matmuls, 2*N^2*C each
        transcendentals=B * n_pad * n_pad,      # exp over the score matrix
        bytes_accessed=int(
            B * C * n_pad * itemsize                    # q streamed once
            + B * C * n_pad * (n_pad // tq) * 2         # bf16 kv re-streamed per q tile
            + B * C * n_pad * itemsize),                # output written
    )

    kernel = functools.partial(
        _spa_kernel, tile_k=tk, n_valid=N, mask_keys=(n_pad != N))

    out = pl.pallas_call(
        kernel,
        out_shape=jax.ShapeDtypeStruct((B, C, n_pad), x.dtype),
        grid_spec=pltpu.PrefetchScalarGridSpec(
            num_scalar_prefetch=0,
            grid=grid,
            in_specs=[
                pl.BlockSpec(memory_space=pltpu.MemorySpace.SMEM),        # gamma (1,)
                pl.BlockSpec((1, C, tq), lambda b, qi, ki: (b, 0, qi)),   # q / residual (f32)
                pl.BlockSpec((1, C, tk), lambda b, qi, ki: (b, 0, ki)),   # kv (bf16)
            ],
            out_specs=pl.BlockSpec((1, C, tq), lambda b, qi, ki: (b, 0, qi)),
            scratch_shapes=[
                pltpu.VMEM((C, tq), jnp.bfloat16),   # hoisted q bf16 cast
                pltpu.VMEM((1, tq), jnp.float32),    # running max
                pltpu.VMEM((1, tq), jnp.float32),    # running denominator
                pltpu.VMEM((C, tq), jnp.float32),    # weighted-value accumulator
            ],
        ),
        compiler_params=pltpu.CompilerParams(
            dimension_semantics=("parallel", "parallel", "arbitrary"),
            vmem_limit_bytes=32 * 1024 * 1024,       # safe on v5e/v6e/v7x
        ),
        cost_estimate=cost,
    )(gamma, xf, kv_bf)

    return out[:, :, :N].reshape(B, C, H, W)


def spa_module_ref(x, gamma):
    """Pure-JAX f32 reference mirroring the PyTorch forward exactly."""
    B, C, H, W = x.shape
    N = H * W
    xf = x.reshape(B, C, N)
    proj_query = jnp.transpose(xf, (0, 2, 1))             # (B, N, C)
    energy = jnp.einsum("bnc,bcm->bnm", proj_query, xf)   # (B, N, N)
    attn = jax.nn.softmax(energy, axis=-1)
    out = jnp.einsum("bcn,bmn->bcm", xf, attn)            # value @ attn^T
    out = out.reshape(B, C, H, W)
    return gamma[0] * out + x


if __name__ == "__main__":
    k1, k2 = jax.random.split(jax.random.PRNGKey(0))

    # nn.Parameter(torch.zeros(1)) in the module; nonzero here so the
    # attention path is actually exercised.
    gamma = jnp.array([0.5], dtype=jnp.float32)

    # Main case: N = 256 (multiple of 128), matches the module's typical use.
    B, C, H, W = 2, 4, 16, 16
    x = jax.random.normal(k1, (B, C, H, W), dtype=jnp.float32)
    y = jax.block_until_ready(spa_module_forward(x, gamma))
    y_ref = spa_module_ref(x, gamma)
    assert y.shape == (B, C, H, W)
    # bf16 MXU operands + approx reciprocal -> relaxed tolerance vs f32 ref.
    assert jnp.allclose(y, y_ref, atol=2e-2, rtol=2e-2), (
        f"mismatch vs reference, max abs diff = {jnp.max(jnp.abs(y - y_ref))}")

    # Padded / masked-key path: N = 100 (not a multiple of 128).
    x2 = jax.random.normal(k2, (1, 4, 10, 10), dtype=jnp.float32)
    y2 = jax.block_until_ready(spa_module_forward(x2, gamma))
    y2_ref = spa_module_ref(x2, gamma)
    assert y2.shape == x2.shape
    assert jnp.allclose(y2, y2_ref, atol=2e-2, rtol=2e-2), (
        f"padded-path mismatch, max abs diff = {jnp.max(jnp.abs(y2 - y2_ref))}")

    print("KERNEL_OK")
</pallas_src>

<mosaic_0001>
module attributes {stable_mosaic.version = 11 : i64} {
  func.func @_spa_kernel(%arg0: i32, %arg1: i32, %arg2: i32, %arg3: memref<1xf32, #tpu.memory_space<smem>>, %arg4: memref<1x4x256xf32, #tpu.memory_space<vmem>>, %arg5: memref<1x4x256xbf16, #tpu.memory_space<vmem>>, %arg6: memref<1x4x256xf32, #tpu.memory_space<vmem>>, %arg7: memref<4x256xbf16, #tpu.memory_space<vmem>>, %arg8: memref<1x256xf32, #tpu.memory_space<vmem>>, %arg9: memref<1x256xf32, #tpu.memory_space<vmem>>, %arg10: memref<4x256xf32, #tpu.memory_space<vmem>>) attributes {dimension_semantics = [#tpu.dimension_semantics<parallel>, #tpu.dimension_semantics<parallel>, #tpu.dimension_semantics<arbitrary>], iteration_bounds = array<i64: 2, 1, 1>, scalar_prefetch = 0 : i64, scratch_operands = 4 : i64, tpu.core_type = #tpu.core_type<tc>, window_params = [{transform_indices = @transform_0, window_bounds = array<i64: 1>}, {transform_indices = @transform_1, window_bounds = array<i64: 1, 4, 256>}, {transform_indices = @transform_2, window_bounds = array<i64: 1, 4, 256>}, {transform_indices = @transform_3, window_bounds = array<i64: 1, 4, 256>}]} {
    %c0_i32 = arith.constant 0 : i32
    %0 = arith.cmpi eq, %arg2, %c0_i32 : i32
    %1 = arith.extui %0 : i1 to i32
    %c0_i32_0 = arith.constant 0 : i32
    %2 = arith.cmpi ne, %1, %c0_i32_0 : i32
    scf.if %2 {
      %c0_22 = arith.constant 0 : index
      %c0_23 = arith.constant 0 : index
      %c0_24 = arith.constant 0 : index
      %33 = vector.load %arg4[%c0_22, %c0_23, %c0_24] : memref<1x4x256xf32, #tpu.memory_space<vmem>>, vector<1x4x256xf32>
      %34 = vector.shape_cast %33 : vector<1x4x256xf32> to vector<4x256xf32>
      %35 = arith.truncf %34 : vector<4x256xf32> to vector<4x256xbf16>
      %c0_25 = arith.constant 0 : index
      %c0_26 = arith.constant 0 : index
      %36 = vector.load %arg7[%c0_25, %c0_26] : memref<4x256xbf16, #tpu.memory_space<vmem>>, vector<4x256xbf16>
      tpu.vector_store %arg7[%c0_25, %c0_26], %35 {strides = array<i32>} : memref<4x256xbf16, #tpu.memory_space<vmem>>, vector<4x256xbf16>,
      %cst_27 = arith.constant 0xFF800000 : f32
      %37 = vector.broadcast %cst_27 : f32 to vector<1x256xf32>
      %c0_28 = arith.constant 0 : index
      %c0_29 = arith.constant 0 : index
      %38 = vector.load %arg8[%c0_28, %c0_29] : memref<1x256xf32, #tpu.memory_space<vmem>>, vector<1x256xf32>
      tpu.vector_store %arg8[%c0_28, %c0_29], %37 {strides = array<i32>} : memref<1x256xf32, #tpu.memory_space<vmem>>, vector<1x256xf32>,
      %cst_30 = arith.constant 0.000000e+00 : f32
      %39 = vector.broadcast %cst_30 : f32 to vector<1x256xf32>
      %c0_31 = arith.constant 0 : index
      %c0_32 = arith.constant 0 : index
      %40 = vector.load %arg9[%c0_31, %c0_32] : memref<1x256xf32, #tpu.memory_space<vmem>>, vector<1x256xf32>
      tpu.vector_store %arg9[%c0_31, %c0_32], %39 {strides = array<i32>} : memref<1x256xf32, #tpu.memory_space<vmem>>, vector<1x256xf32>,
      %cst_33 = arith.constant 0.000000e+00 : f32
      %41 = vector.broadcast %cst_33 : f32 to vector<4x256xf32>
      %c0_34 = arith.constant 0 : index
      %c0_35 = arith.constant 0 : index
      %42 = vector.load %arg10[%c0_34, %c0_35] : memref<4x256xf32, #tpu.memory_space<vmem>>, vector<4x256xf32>
      tpu.vector_store %arg10[%c0_34, %c0_35], %41 {strides = array<i32>} : memref<4x256xf32, #tpu.memory_space<vmem>>, vector<4x256xf32>,
    } else {
    }
    %c0 = arith.constant 0 : index
    %c0_1 = arith.constant 0 : index
    %3 = vector.load %arg7[%c0, %c0_1] : memref<4x256xbf16, #tpu.memory_space<vmem>>, vector<4x256xbf16>
    %c0_2 = arith.constant 0 : index
    %c0_3 = arith.constant 0 : index
    %c0_4 = arith.constant 0 : index
    %4 = vector.load %arg5[%c0_2, %c0_3, %c0_4] : memref<1x4x256xbf16, #tpu.memory_space<vmem>>, vector<1x4x256xbf16>
    %5 = vector.shape_cast %4 : vector<1x4x256xbf16> to vector<4x256xbf16>
    %cst = arith.constant dense<0.000000e+00> : vector<256x256xf32>
    %6 = tpu.matmul %5, %3, %cst {dimension_numbers = #tpu.dot_dimension_numbers<[0], [0], [1], [1], [0, 1, 1, 1], [], []>} : vector<4x256xbf16>, vector<4x256xbf16>, vector<256x256xf32> -> vector<256x256xf32>
    %c0_5 = arith.constant 0 : index
    %c0_6 = arith.constant 0 : index
    %7 = vector.load %arg8[%c0_5, %c0_6] : memref<1x256xf32, #tpu.memory_space<vmem>>, vector<1x256xf32>
    %cst_7 = arith.constant dense<0xFF800000> : vector<256xf32>
    %8 = vector.multi_reduction <maximumf>, %6, %cst_7 [0] : vector<256x256xf32> to vector<256xf32>
    %9 = vector.shape_cast %8 : vector<256xf32> to vector<1x256xf32>
    %10 = arith.maximumf %7, %9 : vector<1x256xf32>
    %11 = arith.subf %7, %10 : vector<1x256xf32>
    %12 = math.exp %11 : vector<1x256xf32>
    %13 = vector.broadcast %10 : vector<1x256xf32> to vector<256x256xf32>
    %14 = arith.subf %6, %13 : vector<256x256xf32>
    %15 = math.exp %14 : vector<256x256xf32>
    %c0_8 = arith.constant 0 : index
    %c0_9 = arith.constant 0 : index
    %16 = vector.load %arg9[%c0_8, %c0_9] : memref<1x256xf32, #tpu.memory_space<vmem>>, vector<1x256xf32>
    %17 = arith.mulf %12, %16 : vector<1x256xf32>
    %cst_10 = arith.constant dense<0.000000e+00> : vector<256xf32>
    %18 = vector.multi_reduction <add>, %15, %cst_10 [0] : vector<256x256xf32> to vector<256xf32>
    %19 = vector.shape_cast %18 : vector<256xf32> to vector<1x256xf32>
    %20 = arith.addf %17, %19 : vector<1x256xf32>
    %c0_11 = arith.constant 0 : index
    %c0_12 = arith.constant 0 : index
    %21 = vector.load %arg9[%c0_11, %c0_12] : memref<1x256xf32, #tpu.memory_space<vmem>>, vector<1x256xf32>
    tpu.vector_store %arg9[%c0_11, %c0_12], %20 {strides = array<i32>} : memref<1x256xf32, #tpu.memory_space<vmem>>, vector<1x256xf32>,
    %22 = arith.truncf %15 : vector<256x256xf32> to vector<256x256xbf16>
    %cst_13 = arith.constant dense<0.000000e+00> : vector<4x256xf32>
    %23 = tpu.matmul %5, %22, %cst_13 {dimension_numbers = #tpu.dot_dimension_numbers<[1], [0], [0], [1], [0, 0, 1, 1], [], []>} : vector<4x256xbf16>, vector<256x256xbf16>, vector<4x256xf32> -> vector<4x256xf32>
    %c0_14 = arith.constant 0 : index
    %c0_15 = arith.constant 0 : index
    %24 = vector.load %arg10[%c0_14, %c0_15] : memref<4x256xf32, #tpu.memory_space<vmem>>, vector<4x256xf32>
    %25 = vector.broadcast %12 : vector<1x256xf32> to vector<4x256xf32>
    %26 = arith.mulf %25, %24 : vector<4x256xf32>
    %27 = arith.addf %26, %23 : vector<4x256xf32>
    %c0_16 = arith.constant 0 : index
    %c0_17 = arith.constant 0 : index
    %28 = vector.load %arg10[%c0_16, %c0_17] : memref<4x256xf32, #tpu.memory_space<vmem>>, vector<4x256xf32>
    tpu.vector_store %arg10[%c0_16, %c0_17], %27 {strides = array<i32>} : memref<4x256xf32, #tpu.memory_space<vmem>>, vector<4x256xf32>,
    %c0_18 = arith.constant 0 : index
    %c0_19 = arith.constant 0 : index
    %29 = vector.load %arg8[%c0_18, %c0_19] : memref<1x256xf32, #tpu.memory_space<vmem>>, vector<1x256xf32>
    tpu.vector_store %arg8[%c0_18, %c0_19], %10 {strides = array<i32>} : memref<1x256xf32, #tpu.memory_space<vmem>>, vector<1x256xf32>,
    %c0_i32_20 = arith.constant 0 : i32
    %30 = arith.cmpi eq, %arg2, %c0_i32_20 : i32
    %31 = arith.extui %30 : i1 to i32
    %c0_i32_21 = arith.constant 0 : i32
    %32 = arith.cmpi ne, %31, %c0_i32_21 : i32
    scf.if %32 {
      %c0_22 = arith.constant 0 : index
      %c0_23 = arith.constant 0 : index
      %33 = vector.load %arg9[%c0_22, %c0_23] : memref<1x256xf32, #tpu.memory_space<vmem>>, vector<1x256xf32>
      %34 = tpu.reciprocal %33 {approx = true} : vector<1x256xf32> -> vector<1x256xf32>
      %c0_24 = arith.constant 0 : index
      %35 = memref.load %arg3[%c0_24] : memref<1xf32, #tpu.memory_space<smem>>
      %c0_25 = arith.constant 0 : index
      %c0_26 = arith.constant 0 : index
      %36 = vector.load %arg10[%c0_25, %c0_26] : memref<4x256xf32, #tpu.memory_space<vmem>>, vector<4x256xf32>
      %37 = vector.broadcast %34 : vector<1x256xf32> to vector<4x256xf32>
      %38 = arith.mulf %36, %37 : vector<4x256xf32>
      %39 = vector.broadcast %35 : f32 to vector<4x256xf32>
      %40 = arith.mulf %39, %38 : vector<4x256xf32>
      %c0_27 = arith.constant 0 : index
      %c0_28 = arith.constant 0 : index
      %c0_29 = arith.constant 0 : index
      %41 = vector.load %arg4[%c0_27, %c0_28, %c0_29] : memref<1x4x256xf32, #tpu.memory_space<vmem>>, vector<1x4x256xf32>
      %42 = vector.shape_cast %41 : vector<1x4x256xf32> to vector<4x256xf32>
      %43 = arith.addf %40, %42 : vector<4x256xf32>
      %c0_30 = arith.constant 0 : index
      %c0_31 = arith.constant 0 : index
      %c0_32 = arith.constant 0 : index
      %44 = vector.load %arg6[%c0_30, %c0_31, %c0_32] : memref<1x4x256xf32, #tpu.memory_space<vmem>>, vector<1x4x256xf32>
      %45 = vector.shape_cast %44 : vector<1x4x256xf32> to vector<4x256xf32>
      %46 = vector.shape_cast %43 : vector<4x256xf32> to vector<1x4x256xf32>
      tpu.vector_store %arg6[%c0_30, %c0_31, %c0_32], %46 {strides = array<i32>} : memref<1x4x256xf32, #tpu.memory_space<vmem>>, vector<1x4x256xf32>,
    } else {
    }
    return
  }
  func.func @transform_0(%arg0: i32, %arg1: i32, %arg2: i32) -> i32 {
    %c0_i32 = arith.constant 0 : i32
    %c0_i32_0 = arith.constant 0 : i32
    return %c0_i32 : i32
  }
  func.func @transform_1(%arg0: i32, %arg1: i32, %arg2: i32) -> (i32, i32, i32) {
    %c0_i32 = arith.constant 0 : i32
    %c0_i32_0 = arith.constant 0 : i32
    return %arg0, %c0_i32, %arg1 : i32, i32, i32
  }
  func.func @transform_2(%arg0: i32, %arg1: i32, %arg2: i32) -> (i32, i32, i32) {
    %c0_i32 = arith.constant 0 : i32
    %c0_i32_0 = arith.constant 0 : i32
    return %arg0, %c0_i32, %arg2 : i32, i32, i32
  }
  func.func @transform_3(%arg0: i32, %arg1: i32, %arg2: i32) -> (i32, i32, i32) {
    %c0_i32 = arith.constant 0 : i32
    %c0_i32_0 = arith.constant 0 : i32
    return %arg0, %c0_i32, %arg1 : i32, i32, i32
  }
}

</mosaic_0001>

<bundles_post_ra>
// kernel: tpu_custom_call.1
= control target key start
LH: loop header
LB: loop body
LE: loop exit
PB: predicated region body
PF: predicated region fallthrough
CT: control target
= control target key end

     0   :  { %s2509_s0 = inlined_call_operand.<no memory space> [shape: f32[1], index: 0, kind: input, shape index: {}]   ;;  %s2510_s1 = inlined_call_operand.hbm [shape: f32[2,4,256], index: 1, kind: input, shape index: {}]   ;;  %s2511_s2 = inlined_call_operand.hbm [shape: bf16[2,4,256], index: 2, kind: input, shape index: {}]   ;;  %s2512_s3 = inlined_call_operand.hbm [shape: f32[2,4,256], index: 3, kind: output, shape index: {}]  }
   0x1   :  { %8 = sst [smem:[#allocation6]] %s2509_s0 }
   0x2   :  { %9 = vsyncpa [#allocation8], 0 }
   0x3   :  { %11 = vsyncpa [#allocation8 + $0x1], 0 }
   0x4   :  { %12 = vsyncpa [#allocation11], 0 }
   0x5   :  { %14 = vsyncpa [#allocation11 + $0x1], 0 }
   0x6   :  { %15 = vsyncpa [#allocation9], 0 }
   0x7   :  { %17 = vsyncpa [#allocation9 + $0x1], 0  ;;  %s1669_s14 = smov 0   ;;  %s1671_s15 = smov 0  }
   0x8   :  { %s1673_s16 = smov 0   ;;  %s1675_s17 = smov 0  }
   0x9   :  { %s1677_s18 = smov 0   ;;  %s1679_s19 = smov 0  }
   0xa LB: > { %s1243_s0 = sadd.s32 4294967295, %s1637_s19   ;;  %s1244_s20 = sadd.s32 4294967294, %s1637_s19   ;;  %s1637_s19 = sphi %s1679_s19, %s23_s19   ;;  %s1633_s18 = sphi %s1677_s18, %s2729_s18   ;;  %s1629_s17 = sphi %s1675_s17, %s2728_s17   ;;  %s1625_s16 = sphi %s1673_s16, %s2727_s16   ;;  %s1621_s15 = sphi %s1671_s15, %s2726_s15   ;;  %s1617_s14 = sphi %s1669_s14, %s2725_s14  }
   0xb   : > { %s42_s21 = sadd.s32 1, %s1633_s18  ;;  %s72_s22 = sadd.s32 1, %s1625_s16 }
   0xc   : > { %p44_p0 = scmp.ge.s32.totalorder %s42_s21, 2  ;;  %p79_p1 = scmp.ne.s32.totalorder %s1625_s16, %s1621_s15 }
   0xd   : > { %p80_p2 = scmp.eq.s32.totalorder %s1637_s19, 0  ;;  %p85_p3 = scmp.ne.s32.totalorder %s1621_s15, %s1617_s14 }
   0xe   : > { %s2731_s21 = smov (%p44_p0, %s42_s21), 0  ;;  %p86_p5 = scmp.eq.s32.totalorder %s1243_s0, 0 }
   0xf   : > { %p1710_p4 = por %p80_p2, %p79_p1  ;;  %s67_s24 = ssub.s32 %s1633_s18, %s2731_s21 }
  0x10   : > { %p139_p6 = scmp.eq.s32.totalorder %s1243_s0, 1  ;;  %p70_p7 = scmp.eq.s32.totalorder %s67_s24, 0 }
  0x11   : > { %p1716_p8 = por %p86_p5, %p85_p3  ;;  %p145_p10 = scmp.eq.s32.totalorder %s1244_s20, 1 }
  0x12   : > { %p1720_p9 = por %p139_p6, %p79_p1  ;;  %p1303_p13 = scmp.lt.s32.totalorder %s1637_s19, 2 }
  0x13   : > { %s2574_s25 = scalar_select %p1716_p8, 1, 0 }
  0x14   : > { %s2575_s26 = scalar_select %p1720_p9, 1, 0 }
  0x15   : > { %s1725_s27 = scalar_select %p70_p7, %s1625_s16, %s72_s22  }
  0x16   : > { %p1727_p11 = por %p145_p10, %p85_p3  ;;  %s1734_s29 = sand.u32 1, %s1625_s16  }
  0x17   : > { %s1247_s30 = sshll.u32 %s1734_s29, 3  ;;  %s1283_s4 = sshll.u32 %s1633_s18, 7 }
  0x18   : > { %s2576_s28 = scalar_select %p1727_p11, 1, 0 }
  0x19   : > { %s1741_s7 = scalar_lea.hbm %s2510_s1, %s1283_s4  ;;  %s172_s8 = scalar_lea.vmem [#allocation7], %s1247_s30 }
  0x1a   : > { %s182_s9 = sshll.u32 %s172_s8, 4  ;;  %p1747_p0 = pnand %p1303_p13, %p1710_p4  ;;  %s1743_s9 = int_to_ptr.vmem [resolvable:$true] %s182_s9 }
  0x1b   : > { %s169_s11 = scalar_lea.sflag [#allocation8], %s1734_s29  ;;  %s1491_s12 = scalar_lea.hbm %s1741_s7, 128 }
  0x1c   : > { %p1492_p3 = scmp.ne.s32.totalorder %s1741_s7, %s1491_s12  ;;  %p1493_p5 = pneg %p1747_p0 }
  0x1d   : > { %s1496_s20 = scalar_lea.hbm %s2510_s1, 256  ;;  %p1497_p4 = scmp.lt.u32.totalorder %s1741_s7, %s2510_s1 }
  0x1e   : > { %p1494_p6 = pnand %p1493_p5, %p1492_p3  ;;  %p1498_p10 = scmp.lt.u32.totalorder %s1496_s20, %s1491_s12 }
  0x1f   : > { %p1500_p12 = scmp.lt.u32.totalorder %s1491_s12, %s1741_s7 }
  0x20   : > { %p1495_p7 = pneg %p1494_p6  ;;  %p1499_p13 = por %p1498_p10, %p1497_p4 }
  0x22   : > { %p1501_p1 = por %p1500_p12, %p1499_p13 }
  0x24   : > { %p1502_p2 = pnand %p1501_p1, %p1495_p7 }
  0x26   : > { %1505 = shalt.err (!%p1502_p2)
}
  0x27   : > { %s1506_s24 = scalar_lea.vmem %s1743_s9, 128  ;;  %s1639_s30 = smov [#allocation7]  }
  0x28   : > { %p1507_p3 = scmp.ne.s32.totalorder %s1743_s9, %s1506_s24  ;;  %s1511_s4 = sshll.u32 %s1639_s30, 4  ;;  %s1512_s4 = int_to_ptr.vmem [resolvable:$false] %s1511_s4 }
  0x29   : > { %s1513_s5 = scalar_lea.vmem %s1512_s4, 256  ;;  %p1514_p9 = scmp.lt.s32.totalorder %s1743_s9, %s1512_s4 }
  0x2a   : > { %p1509_p6 = pnand %p1507_p3, %p1493_p5  ;;  %p1515_p4 = scmp.lt.s32.totalorder %s1513_s5, %s1506_s24 }
  0x2c   : > { %p1510_p11 = pneg %p1509_p6  ;;  %p1516_p10 = por %p1515_p4, %p1514_p9 }
  0x2e   : > { %p1517_p12 = pnand %p1516_p10, %p1510_p11 }
  0x30   : > { %1520 = shalt.err (!%p1517_p12)
}
  0x31   : > { %1295 = dma.hbm_to_vmem [thread:$0]  (!%p1747_p0), %s1741_s7, 128, %s1743_s9, %s169_s11  }
  0x32   : > { %p2578_p1 = scmp.lt.s32.totalorder %s1637_s19, 3  ;;  %p2579_p2 = scmp.ge.s32.totalorder %s1637_s19, 1 }
  0x33   : > { %s1250_s8 = sshll.u32 %s1734_s29, 2  ;;  %s1284_s12 = sshll.u32 %s1633_s18, 6 }
  0x34   : > { %p1783_p7 = pnand %p2579_p2, %p2578_p1  ;;  %s1792_s20 = scalar_lea.hbm %s2511_s2, %s1284_s12 }
  0x35   : > { %s193_s22 = scalar_lea.vmem [#allocation10], %s1250_s8  ;;  %s190_s7 = scalar_lea.sflag [#allocation11], %s1734_s29 }
  0x36   : > { %s2580_s6 = scalar_select %p1783_p7, 1, 0 }
  0x37   : > { %s203_s23 = sshll.u32 %s193_s22, 4  ;;  %s1521_s9 = scalar_lea.hbm %s1792_s20, 64  ;;  %s204_s23 = int_to_ptr.vmem [resolvable:$true] %s203_s23 }
  0x38   : > { %p1522_p9 = scmp.ne.s32.totalorder %s1792_s20, %s1521_s9  ;;  %s1526_s30 = scalar_lea.hbm %s2511_s2, 128 }
  0x39   : > { %p1527_p3 = scmp.lt.u32.totalorder %s1792_s20, %s2511_s2  ;;  %p1528_p6 = scmp.lt.u32.totalorder %s1526_s30, %s1521_s9 }
  0x3a   : > { %p1524_p11 = pnand %p1522_p9, %p1493_p5  ;;  %p1530_p10 = scmp.lt.u32.totalorder %s1521_s9, %s1792_s20 }
  0x3b   : > { %p1529_p4 = por %p1528_p6, %p1527_p3 }
  0x3c   : > { %p1525_p13 = pneg %p1524_p11 }
  0x3d   : > { %p1531_p12 = por %p1530_p10, %p1529_p4 }
  0x3f   : > { %p1532_p1 = pnand %p1531_p12, %p1525_p13 }
  0x41   : > { %1535 = shalt.err (!%p1532_p1)
}
  0x42   : > { %s1536_s29 = scalar_lea.vmem %s204_s23, 64  ;;  %s1640_s8 = smov [#allocation10]  }
  0x43   : > { %p1537_p2 = scmp.ne.s32.totalorder %s204_s23, %s1536_s29  ;;  %s1541_s12 = sshll.u32 %s1640_s8, 4  ;;  %s1542_s12 = int_to_ptr.vmem [resolvable:$false] %s1541_s12 }
  0x44   : > { %s1543_s13 = scalar_lea.vmem %s1542_s12, 128  ;;  %p1544_p8 = scmp.lt.s32.totalorder %s204_s23, %s1542_s12 }
  0x45   : > { %p1539_p9 = pnand %p1537_p2, %p1493_p5  ;;  %p1545_p7 = scmp.lt.s32.totalorder %s1543_s13, %s1536_s29 }
  0x47   : > { %p1540_p11 = pneg %p1539_p9  ;;  %p1546_p3 = por %p1545_p7, %p1544_p8 }
  0x49   : > { %p1547_p6 = pnand %p1546_p3, %p1540_p11 }
  0x4b   : > { %1550 = shalt.err (!%p1547_p6)
}
  0x4c   : > { %1298 = dma.hbm_to_vmem [thread:$0]  (!%p1747_p0), %s1792_s20, 64, %s204_s23, %s190_s7  }
  0x4d   : > { %p2581_p13 = scmp.ne.s32.totalorder %s2580_s6, 0 }
  0x4f   : > { %212 = sbr.rel (%p2581_p13) target bundleno = 881 (0x371), region = 32 }
  0x56   : > { %s1817_s0 = sand.u32 1, %s1621_s15   ;;  %p2582_p8 = scmp.ne.s32.totalorder %s2574_s25, 0 }
  0x57   : > { %s1254_s22 = sshll.u32 %s1817_s0, 3  ;;  %s215_s9 = scalar_lea.sflag [#allocation8], %s1817_s0 }
  0x58   : > { %s1823_s11 = scalar_lea.vmem [#allocation7], %s1254_s22 }
  0x59   : > { %1604 = dma.done.wait (%p2582_p8), %s215_s9, 128  }
  0x5a   : > { %1606 = vsyncadd (%p2582_p8), %s215_s9, 4294967168  ;;  %s1255_s10 = sshll.u32 %s1817_s0, 2  ;;  %s224_s6 = scalar_lea.sflag [#allocation11], %s1817_s0 }
  0x5b   : > { %s1831_s20 = scalar_lea.vmem [#allocation10], %s1255_s10 }
  0x5c   : > { %1608 = dma.done.wait (%p2582_p8), %s224_s6, 64  }
  0x5d   : > { %1610 = vsyncadd (%p2582_p8), %s224_s6, 4294967232  ;;  %v1641_v0 = vmov 0   ;;  %v1259_v1 = vld.sshfl [vmem:[%s1831_s20] sm:$0x33 pattern:$0x76325410]  ;;  %v2515_v29 = vlaneseq }
  0x5e   : > { %430 = vmatprep.mubr.bf16.mxu0 %v1641_v0  ;;  %v263_v2 = vld [vmem:[%s1823_s11] sm:$0xff]  ;;  %301 = vxpose.xlu0.c.b16.start.end [1/1] (short) %v1259_v1, 128  ;;  %v298_v3 = vcombine.high %v1259_v1, %v1259_v1  ;;  %vm391_vm0 = vcmask 1041408   ;;  %vm342_vm1 = vcmask 31744   ;;  %v2583_v33 = vmov 0  ;;  %s1094_s25 = sld [smem:[#allocation6]]  ;;  %s1285_s23 = sshll.u32 %s1629_s17, 7 }
  0x5f   : > { %v265_v4 = vcombine.high %v263_v2, %v263_v2  ;;  %vm1870_vm2 = vcmp.lt.s32.totalorder %v2515_v29, 256  ;;  %v1642_v36 = vmov -inf   ;;  %v2526_v29 = vmov 0.0   ;;  %s254_s7 = scalar_lea.vmem [#allocation12], %s1254_s22  ;;  %s2460_s5 = scalar_lea.hbm %s2512_s3, %s1285_s23 }
  0x60   : > { %1055 = vmatprep.mubr.bf16.mxu1 %v298_v3  ;;  %v2584_v33 = vsel %vm1870_vm2, 4294967295, %v2583_v33  ;;  %285 = vst.msk [vmem:[#allocation3] sm:$0x3] %vm1870_vm2, %v1642_v36  ;;  %286 = vst.msk [vmem:[#allocation4] sm:$0x3] %vm1870_vm2, %v2526_v29  ;;  %s1130_s24 = sshll.u32 %s254_s7, 4  ;;  %s2462_s24 = int_to_ptr.vmem [resolvable:$true] %s1130_s24 }
  0x61   : > { %v1257_v5 = vpack.c.bf16 %v265_v4, %v263_v2  ;;  %2585 = vst [vmem:[#allocation16_spill] sm:$0xff] %v2584_v33  ;;  %s1114_s29 = scalar_lea.sflag [#allocation9], %s1817_s0  ;;  %s1551_s8 = scalar_lea.vmem %s2462_s24, 128 }
  0x62   : > { %p1552_p0 = scmp.ne.s32.totalorder %s2462_s24, %s1551_s8  ;;  %p2722_p5 = scmp.ne.s32.totalorder %s2575_s26, 0 }
  0x63   : > { %1258 = vst.sshfl [vmem:[#allocation2] sm:$0x33 pattern:$0x76325410] %v1257_v5  ;;  %s1645_s17 = smov [#allocation12]  }
  0x64   : > { %p1553_p7 = pnand %p1552_p0, %p2722_p5  ;;  %s1555_s12 = sshll.u32 %s1645_s17, 4  ;;  %s1556_s12 = int_to_ptr.vmem [resolvable:$false] %s1555_s12 }
  0x65   : > { %s1557_s13 = scalar_lea.vmem %s1556_s12, 256  ;;  %p1558_p10 = scmp.lt.s32.totalorder %s2462_s24, %s1556_s12 }
  0x66   : > { %p1554_p4 = pneg %p1553_p7  ;;  %p1559_p12 = scmp.lt.s32.totalorder %s1557_s13, %s1551_s8 }
  0x68   : > { %p1560_p1 = por %p1559_p12, %p1558_p10 }
  0x6a   : > { %v1260_v6 = vld.sshfl [vmem:[#allocation2] sm:$0x33 pattern:$0x76325410]  ;;  %p1561_p2 = pnand %p1560_p1, %p1554_p4 }
  0x6b   : > { %v341_v7 = vcombine.high %v1260_v6, %v1260_v6  ;;  %v393_v8 = vsel %vm391_vm0, %v1260_v6, 0 }
  0x6d   : > { %1261 = vmatprep.subr.msk.bf16.mxu0 %vm391_vm0, %v341_v7 }
  0x6e   : > { %399 = vmatpush1.bf16.msra.mxu0 %v393_v8 }
  0x7b   : > { %317 = vxpose.xlu0.c.b16.start.end [1/1] (short) %v298_v3, 128 }
  0xc4   : > { %v309_v9 = vpop.trf.xlu0 }
  0xc5   : > { %1262 = vmatmul.mubr.msk.bf16.vlgmr.msra.gmra.mrb[0].mxu0 %vm342_vm1, %v309_v9 }
  0xc6   : > { %440 = vmatprep.mubr.bf16.mxu0 %v1641_v0 }
  0xc8   : > { %v310_v10 = vpop.trf.xlu0 }
  0xcc   : > { %v311_v11 = vpop.trf.xlu0 }
  0xcd   : > { %1263 = vmatmul.mubr.msk.bf16.gmra.mrb[4].mxu0 %vm342_vm1, %v310_v10 }
  0xce   : > { %450 = vmatprep.mubr.bf16.mxu0 %v1641_v0 }
  0xd0   : > { %v312_v12 = vpop.trf.xlu0 }
  0xd4   : > { %v313_v13 = vpop.trf.xlu0 }
  0xd5   : > { %1264 = vmatmul.mubr.msk.bf16.gmra.mrb[8].mxu0 %vm342_vm1, %v311_v11 }
  0xd6   : > { %460 = vmatprep.mubr.bf16.mxu0 %v1641_v0 }
  0xd8   : > { %v314_v14 = vpop.trf.xlu0 }
  0xdc   : > { %v315_v15 = vpop.trf.xlu0 }
  0xdd   : > { %1265 = vmatmul.mubr.msk.bf16.gmra.mrb[12].mxu0 %vm342_vm1, %v312_v12 }
  0xde   : > { %470 = vmatprep.mubr.bf16.mxu0 %v1641_v0 }
  0xe0   : > { %v316_v16 = vpop.trf.xlu0 }
  0xe4   : > { %v325_v17 = vpop.trf.xlu0 }
  0xe5   : > { %1266 = vmatmul.mubr.msk.bf16.gmra.mrb[16].mxu0 %vm342_vm1, %v313_v13 }
  0xe6   : > { %480 = vmatprep.mubr.bf16.mxu0 %v1641_v0 }
  0xe8   : > { %v326_v18 = vpop.trf.xlu0 }
  0xec   : > { %v327_v19 = vpop.trf.xlu0 }
  0xed   : > { %1267 = vmatmul.mubr.msk.bf16.gmra.mrb[20].mxu0 %vm342_vm1, %v314_v14 }
  0xee   : > { %490 = vmatprep.mubr.bf16.mxu0 %v1641_v0 }
  0xf0   : > { %v328_v20 = vpop.trf.xlu0 }
  0xf4   : > { %v329_v21 = vpop.trf.xlu0 }
  0xf5   : > { %1268 = vmatmul.mubr.msk.bf16.gmra.mrb[24].mxu0 %vm342_vm1, %v315_v15 }
  0xf6   : > { %500 = vmatprep.mubr.bf16.mxu0 %v1641_v0 }
  0xf8   : > { %v330_v22 = vpop.trf.xlu0 }
  0xfc   : > { %v331_v23 = vpop.trf.xlu0 }
  0xfd   : > { %1269 = vmatmul.mubr.msk.bf16.gmra.mrb[28].mxu0 %vm342_vm1, %v316_v16 }
  0xfe   : > { %510 = vmatprep.mubr.bf16.mxu0 %v1641_v0 }
 0x100   : > { %v332_v24 = vpop.trf.xlu0 }
 0x105   : > { %1270 = vmatmul.mubr.msk.bf16.gmra.mrb[32].mxu0 %vm342_vm1, %v325_v17 }
 0x106   : > { %520 = vmatprep.mubr.bf16.mxu0 %v1641_v0 }
 0x10d   : > { %1271 = vmatmul.mubr.msk.bf16.gmra.mrb[36].mxu0 %vm342_vm1, %v326_v18 }
 0x10e   : > { %530 = vmatprep.mubr.bf16.mxu0 %v1641_v0 }
 0x115   : > { %1272 = vmatmul.mubr.msk.bf16.gmra.mrb[40].mxu0 %vm342_vm1, %v327_v19 }
 0x116   : > { %540 = vmatprep.mubr.bf16.mxu0 %v1641_v0 }
 0x11d   : > { %1273 = vmatmul.mubr.msk.bf16.gmra.mrb[44].mxu0 %vm342_vm1, %v328_v20 }
 0x11e   : > { %550 = vmatprep.mubr.bf16.mxu0 %v1641_v0 }
 0x125   : > { %1274 = vmatmul.mubr.msk.bf16.gmra.mrb[48].mxu0 %vm342_vm1, %v329_v21 }
 0x126   : > { %560 = vmatprep.mubr.bf16.mxu0 %v1641_v0 }
 0x12d   : > { %1275 = vmatmul.mubr.msk.bf16.gmra.mrb[52].mxu0 %vm342_vm1, %v330_v22 }
 0x12e   : > { %570 = vmatprep.mubr.bf16.mxu0 %v1641_v0 }
 0x135   : > { %1276 = vmatmul.mubr.msk.bf16.gmra.mrb[56].mxu0 %vm342_vm1, %v331_v23 }
 0x136   : > { %580 = vmatprep.mubr.bf16.mxu0 %v1641_v0 }
 0x13d   : > { %1277 = vmatmul.mubr.msk.bf16.gmra.mrb[60].mxu0 %vm342_vm1, %v332_v24 }
 0x198   : > { %v1855_v25 = vpop.f32.mrb[0].mxu0 }
 0x199   : > { %v1857_v26 = vpop.f32.mrb[1].mxu0 }
 0x19a   : > { %v1859_v27 = vpop.f32.mrb[2].mxu0 }
 0x19b   : > { %v1861_v28 = vpop.f32.mrb[3].mxu0 }
 0x1a0   : > { %v1863_v30 = vpop.f32.mrb[4].mxu0 }
 0x1a1   : > { %v592_v31 = vmax.f32 %v1855_v25, %v1863_v30  ;;  %v1867_v32 = vpop.f32.mrb[5].mxu0 }
 0x1a2   : > { %v629_v34 = vmax.f32 %v1857_v26, %v1867_v32  ;;  %v1876_v35 = vpop.f32.mrb[6].mxu0 }
 0x1a3   : > { %v593_v37 = vmax.f32 %v1859_v27, %v1876_v35  ;;  %v1882_v38 = vpop.f32.mrb[7].mxu0 }
 0x1a4   : > { %v630_v39 = vmax.f32 %v1861_v28, %v1882_v38 }
 0x1a8   : > { %v1886_v40 = vpop.f32.mrb[8].mxu0 }
 0x1a9   : > { %v594_v41 = vmax.f32 %v592_v31, %v1886_v40  ;;  %v1889_v42 = vpop.f32.mrb[9].mxu0 }
 0x1aa   : > { %v631_v43 = vmax.f32 %v629_v34, %v1889_v42  ;;  %v1892_v44 = vpop.f32.mrb[10].mxu0 }
 0x1ab   : > { %v595_v45 = vmax.f32 %v593_v37, %v1892_v44  ;;  %v1895_v46 = vpop.f32.mrb[11].mxu0 }
 0x1ac   : > { %v632_v47 = vmax.f32 %v630_v39, %v1895_v46 }
 0x1b0   : > { %v1898_v48 = vpop.f32.mrb[12].mxu0 }
 0x1b1   : > { %v596_v49 = vmax.f32 %v594_v41, %v1898_v48  ;;  %v1901_v50 = vpop.f32.mrb[13].mxu0 }
 0x1b2   : > { %v633_v51 = vmax.f32 %v631_v43, %v1901_v50  ;;  %v1904_v52 = vpop.f32.mrb[14].mxu0 }
 0x1b3   : > { %v597_v53 = vmax.f32 %v595_v45, %v1904_v52  ;;  %v1907_v54 = vpop.f32.mrb[15].mxu0 }
 0x1b4   : > { %v634_v55 = vmax.f32 %v632_v47, %v1907_v54 }
 0x1b8   : > { %v1910_v56 = vpop.f32.mrb[16].mxu0 }
 0x1b9   : > { %v598_v57 = vmax.f32 %v596_v49, %v1910_v56  ;;  %v1913_v58 = vpop.f32.mrb[17].mxu0 }
 0x1ba   : > { %v635_v59 = vmax.f32 %v633_v51, %v1913_v58  ;;  %v1916_v60 = vpop.f32.mrb[18].mxu0 }
 0x1bb   : > { %v599_v61 = vmax.f32 %v597_v53, %v1916_v60  ;;  %v1919_v62 = vpop.f32.mrb[19].mxu0 }
 0x1bc   : > { %v636_v63 = vmax.f32 %v634_v55, %v1919_v62 }
 0x1c0   : > { %v1922_v0 = vpop.f32.mrb[20].mxu0 }
 0x1c1   : > { %v600_v1 = vmax.f32 %v598_v57, %v1922_v0  ;;  %v1925_v2 = vpop.f32.mrb[21].mxu0 }
 0x1c2   : > { %v637_v3 = vmax.f32 %v635_v59, %v1925_v2  ;;  %v1928_v4 = vpop.f32.mrb[22].mxu0 }
 0x1c3   : > { %v601_v5 = vmax.f32 %v599_v61, %v1928_v4  ;;  %v1931_v6 = vpop.f32.mrb[23].mxu0 }
 0x1c4   : > { %v638_v7 = vmax.f32 %v636_v63, %v1931_v6 }
 0x1c8   : > { %v1934_v8 = vpop.f32.mrb[24].mxu0 }
 0x1c9   : > { %v602_v9 = vmax.f32 %v600_v1, %v1934_v8  ;;  %v1937_v10 = vpop.f32.mrb[25].mxu0 }
 0x1ca   : > { %v639_v11 = vmax.f32 %v637_v3, %v1937_v10  ;;  %v1940_v12 = vpop.f32.mrb[26].mxu0 }
 0x1cb   : > { %v603_v13 = vmax.f32 %v601_v5, %v1940_v12  ;;  %v1943_v14 = vpop.f32.mrb[27].mxu0 }
 0x1cc   : > { %v640_v15 = vmax.f32 %v638_v7, %v1943_v14 }
 0x1d0   : > { %v1946_v16 = vpop.f32.mrb[28].mxu0 }
 0x1d1   : > { %v604_v17 = vmax.f32 %v602_v9, %v1946_v16  ;;  %v1949_v18 = vpop.f32.mrb[29].mxu0 }
 0x1d2   : > { %v641_v19 = vmax.f32 %v639_v11, %v1949_v18  ;;  %v1952_v20 = vpop.f32.mrb[30].mxu0 }
 0x1d3   : > { %v605_v21 = vmax.f32 %v603_v13, %v1952_v20  ;;  %v1955_v22 = vpop.f32.mrb[31].mxu0 }
 0x1d4   : > { %v642_v23 = vmax.f32 %v640_v15, %v1955_v22 }
 0x1d8   : > { %v1958_v24 = vpop.f32.mrb[32].mxu0 }
 0x1d9   : > { %v606_v31 = vmax.f32 %v604_v17, %v1958_v24  ;;  %v1961_v34 = vpop.f32.mrb[33].mxu0 }
 0x1da   : > { %v643_v36 = vmax.f32 %v641_v19, %v1961_v34  ;;  %v1964_v37 = vpop.f32.mrb[34].mxu0 }
 0x1db   : > { %v607_v39 = vmax.f32 %v605_v21, %v1964_v37  ;;  %v1967_v41 = vpop.f32.mrb[35].mxu0 }
 0x1dc   : > { %v644_v43 = vmax.f32 %v642_v23, %v1967_v41 }
 0x1e0   : > { %v1970_v45 = vpop.f32.mrb[36].mxu0 }
 0x1e1   : > { %v608_v47 = vmax.f32 %v606_v31, %v1970_v45  ;;  %v1973_v49 = vpop.f32.mrb[37].mxu0 }
 0x1e2   : > { %v645_v51 = vmax.f32 %v643_v36, %v1973_v49  ;;  %v1976_v53 = vpop.f32.mrb[38].mxu0 }
 0x1e3   : > { %2586 = vst [vmem:[#allocation17_spill] sm:$0xff] %v1976_v53  ;;  %v609_v55 = vmax.f32 %v607_v39, %v1976_v53  ;;  %v1979_v57 = vpop.f32.mrb[39].mxu0 }
 0x1e4   : > { %2587 = vst [vmem:[#allocation18_spill] sm:$0xff] %v1979_v57  ;;  %v646_v59 = vmax.f32 %v644_v43, %v1979_v57 }
 0x1e8   : > { %v1982_v61 = vpop.f32.mrb[40].mxu0 }
 0x1e9   : > { %2588 = vst [vmem:[#allocation19_spill] sm:$0xff] %v1982_v61  ;;  %v610_v63 = vmax.f32 %v608_v47, %v1982_v61  ;;  %v1985_v1 = vpop.f32.mrb[41].mxu0 }
 0x1ea   : > { %2589 = vst [vmem:[#allocation20_spill] sm:$0xff] %v1985_v1  ;;  %v647_v3 = vmax.f32 %v645_v51, %v1985_v1  ;;  %v1988_v5 = vpop.f32.mrb[42].mxu0  ;;  %v2612_v1 = vlaneseq }
 0x1eb   : > { %2590 = vst [vmem:[#allocation21_spill] sm:$0xff] %v1988_v5  ;;  %v611_v7 = vmax.f32 %v609_v55, %v1988_v5  ;;  %v1991_v9 = vpop.f32.mrb[43].mxu0 }
 0x1ec   : > { %2591 = vst [vmem:[#allocation22_spill] sm:$0xff] %v1991_v9  ;;  %v648_v11 = vmax.f32 %v646_v59, %v1991_v9  ;;  %v673_v61 = vshrl.u32 %v2612_v1, 7 }
 0x1f0   : > { %v1994_v13 = vpop.f32.mrb[44].mxu0 }
 0x1f1   : > { %2592 = vst [vmem:[#allocation23_spill] sm:$0xff] %v1994_v13  ;;  %v612_v15 = vmax.f32 %v610_v63, %v1994_v13  ;;  %v1997_v17 = vpop.f32.mrb[45].mxu0  ;;  %v1644_v13 = vmov 1966171168  }
 0x1f2   : > { %2593 = vst [vmem:[#allocation24_spill] sm:$0xff] %v1997_v17  ;;  %v649_v19 = vmax.f32 %v647_v3, %v1997_v17  ;;  %v2000_v21 = vpop.f32.mrb[46].mxu0 }
 0x1f3   : > { %2594 = vst [vmem:[#allocation25_spill] sm:$0xff] %v2000_v21  ;;  %v613_v23 = vmax.f32 %v611_v7, %v2000_v21  ;;  %v2003_v31 = vpop.f32.mrb[47].mxu0 }
 0x1f4   : > { %2595 = vst [vmem:[#allocation26_spill] sm:$0xff] %v2003_v31  ;;  %v650_v36 = vmax.f32 %v648_v11, %v2003_v31 }
 0x1f8   : > { %v2006_v39 = vpop.f32.mrb[48].mxu0 }
 0x1f9   : > { %2596 = vst [vmem:[#allocation27_spill] sm:$0xff] %v2006_v39  ;;  %v614_v43 = vmax.f32 %v612_v15, %v2006_v39  ;;  %v2009_v47 = vpop.f32.mrb[49].mxu0 }
 0x1fa   : > { %2597 = vst [vmem:[#allocation28_spill] sm:$0xff] %v2009_v47  ;;  %v651_v51 = vmax.f32 %v649_v19, %v2009_v47  ;;  %v2012_v55 = vpop.f32.mrb[50].mxu0 }
 0x1fb   : > { %2598 = vst [vmem:[#allocation29_spill] sm:$0xff] %v2012_v55  ;;  %v615_v59 = vmax.f32 %v613_v23, %v2012_v55  ;;  %v2015_v63 = vpop.f32.mrb[51].mxu0 }
 0x1fc   : > { %2599 = vst [vmem:[#allocation30_spill] sm:$0xff] %v2015_v63  ;;  %v652_v3 = vmax.f32 %v650_v36, %v2015_v63 }
 0x200   : > { %v2018_v7 = vpop.f32.mrb[52].mxu0 }
 0x201   : > { %2600 = vst [vmem:[#allocation31_spill] sm:$0xff] %v2018_v7  ;;  %v616_v11 = vmax.f32 %v614_v43, %v2018_v7  ;;  %v2024_v15 = vpop.f32.mrb[53].mxu0 }
 0x202   : > { %2601 = vst [vmem:[#allocation32_spill] sm:$0xff] %v2024_v15  ;;  %v653_v19 = vmax.f32 %v651_v51, %v2024_v15  ;;  %v2027_v47 = vpop.f32.mrb[54].mxu0 }
 0x203   : > { %2602 = vst [vmem:[#allocation33_spill] sm:$0xff] %v2027_v47  ;;  %v617_v23 = vmax.f32 %v615_v59, %v2027_v47  ;;  %v2030_v55 = vpop.f32.mrb[55].mxu0 }
 0x204   : > { %2603 = vst [vmem:[#allocation34_spill] sm:$0xff] %v2030_v55  ;;  %v654_v36 = vmax.f32 %v652_v3, %v2030_v55 }
 0x208   : > { %v2033_v63 = vpop.f32.mrb[56].mxu0 }
 0x209   : > { %2604 = vst [vmem:[#allocation35_spill] sm:$0xff] %v2033_v63  ;;  %v618_v39 = vmax.f32 %v616_v11, %v2033_v63  ;;  %v2036_v31 = vpop.f32.mrb[57].mxu0 }
 0x20a   : > { %2605 = vst [vmem:[#allocation36_spill] sm:$0xff] %v2036_v31  ;;  %v655_v43 = vmax.f32 %v653_v19, %v2036_v31  ;;  %v2039_v29 = vpop.f32.mrb[58].mxu0 }
 0x20b   : > { %2606 = vst [vmem:[#allocation37_spill] sm:$0xff] %v2039_v29  ;;  %v619_v51 = vmax.f32 %v617_v23, %v2039_v29  ;;  %v2042_v15 = vpop.f32.mrb[59].mxu0 }
 0x20c   : > { %2607 = vst [vmem:[#allocation38_spill] sm:$0xff] %v2042_v15  ;;  %v656_v59 = vmax.f32 %v654_v36, %v2042_v15 }
 0x210   : > { %v2045_v47 = vpop.f32.mrb[60].mxu0 }
 0x211   : > { %2608 = vst [vmem:[#allocation39_spill] sm:$0xff] %v2045_v47  ;;  %v620_v3 = vmax.f32 %v618_v39, %v2045_v47  ;;  %v2048_v55 = vpop.f32.mrb[61].mxu0  ;;  %v670_v39 = vunpack.c.l.s4 %v1644_v13  ;;  %v2062_v13 = vsub.s32 0, %v673_v61 }
 0x212   : > { %2609 = vst [vmem:[#allocation40_spill] sm:$0xff] %v2048_v55  ;;  %v657_v11 = vmax.f32 %v655_v43, %v2048_v55  ;;  %v2051_v63 = vpop.f32.mrb[62].mxu0 }
 0x213   : > { %2610 = vst [vmem:[#allocation41_spill] sm:$0xff] %v2051_v63  ;;  %v621_v19 = vmax.f32 %v619_v51, %v2051_v63  ;;  %v2054_v31 = vpop.f32.mrb[63].mxu0  ;;  %v671_v55 = vunpack.c.0.s8 %v670_v39  ;;  %2614 = vst [vmem:[#allocation44_spill] sm:$0xff] %v2062_v13 }
 0x214   : > { %2611 = vst [vmem:[#allocation42_spill] sm:$0xff] %v2054_v31  ;;  %v658_v23 = vmax.f32 %v656_v59, %v2054_v31 }
 0x215   : > { %v622_v29 = vmax.f32 %v620_v3, %v621_v19  ;;  %v2058_v59 = vsub.s32 %v671_v55, %v673_v61 }
 0x216   : > { %v659_v7 = vmax.f32 %v657_v11, %v658_v23 }
 0x217   : > { %v623_v21 = vrot.slane %v622_v29, 4  ;;  %2613 = vst [vmem:[#allocation43_spill] sm:$0xff] %v2058_v59 }
 0x218   : > { %v660_v36 = vrot.slane %v659_v7, 4 }
 0x219   : > { %v624_v15 = vmax.f32 %v622_v29, %v623_v21  ;;  %v591_v29 = vld [vmem:[#allocation3] sm:$0x3] }
 0x21a   : > { %v661_v17 = vmax.f32 %v659_v7, %v660_v36  ;;  %v2064_v7 = vsub.s32 1, %v673_v61  ;;  %v2638_v36 = vld [vmem:[#allocation40_spill] sm:$0xff]  ;;  %v2639_v23 = vld [vmem:[#allocation41_spill] sm:$0xff] }
 0x21b   : > { %v625_v47 = vrot.slane %v624_v15, 2 }
 0x21c   : > { %v662_v9 = vrot.slane %v661_v17, 2 }
 0x21d   : > { %v626_v5 = vmax.f32 %v624_v15, %v625_v47 }
 0x21e   : > { %v663_v43 = vmax.f32 %v661_v17, %v662_v9 }
 0x21f   : > { %v627_v51 = vrot.slane %v626_v5, 1 }
 0x220   : > { %v664_v63 = vrot.slane %v663_v43, 1 }
 0x221   : > { %v628_v57 = vmax.f32 %v626_v5, %v627_v51  ;;  %v2616_v51 = vld [vmem:[#allocation18_spill] sm:$0xff] }
 0x222   : > { %v665_v53 = vmax.f32 %v663_v43, %v664_v63  ;;  %v2636_v43 = vld [vmem:[#allocation38_spill] sm:$0xff] }
 0x224   : > { %v668_v3 = vcombine.low %v628_v57, %v665_v53 }
 0x226   : > { %v675_v11 = vrot.slane %v668_v3, %v2058_v59  ;;  %v2617_v3 = vld [vmem:[#allocation19_spill] sm:$0xff] }
 0x228   : > { %v682_v21 = vrot.slane %v675_v11, %v2058_v59  ;;  %v2618_v11 = vld [vmem:[#allocation20_spill] sm:$0xff]  ;;  %v2635_v59 = vld [vmem:[#allocation37_spill] sm:$0xff] }
 0x22a   : > { %v684_v9 = vmax.f32 %v591_v29, %v682_v21  ;;  %v2620_v21 = vld [vmem:[#allocation22_spill] sm:$0xff] }
 0x22c   : > { %v685_v17 = vsub.f32 %v591_v29, %v684_v9  ;;  %v2067_v1 = vrot.slane %v684_v9, %v2062_v13  ;;  %v2070_v5 = vrot.slane %v684_v9, %v2064_v7  ;;  %1088 = vst.msk [vmem:[#allocation3] sm:$0x3] %vm1870_vm2, %v684_v9  ;;  %v2619_v29 = vld [vmem:[#allocation21_spill] sm:$0xff]  ;;  %v2621_v9 = vld [vmem:[#allocation23_spill] sm:$0xff] }
 0x22d   : > { %v2633_v13 = vld [vmem:[#allocation35_spill] sm:$0xff] }
 0x22e   : > { %v686_v19 = vmul.f32 1.442695, %v685_v17  ;;  %v2615_v17 = vld [vmem:[#allocation17_spill] sm:$0xff]  ;;  %v2640_v63 = vsub.f32 %v1855_v25, %v2067_v1  ;;  %v2641_v55 = vsub.f32 %v1857_v26, %v2070_v5  ;;  %v2642_v61 = vsub.f32 %v1859_v27, %v2067_v1 }
 0x22f   : > { %v2643_v57 = vsub.f32 %v1861_v28, %v2070_v5  ;;  %v2644_v15 = vsub.f32 %v1863_v30, %v2067_v1  ;;  %v2645_v25 = vsub.f32 %v1867_v32, %v2070_v5  ;;  %v2647_v28 = vsub.f32 %v1882_v38, %v2070_v5 }
 0x230   : > { %v763_v33 = vmul.f32 1.442695, %v2640_v63  ;;  %v765_v47 = vmul.f32 1.442695, %v2641_v55  ;;  %1358 = vpow2.f32 %v686_v19  ;;  %v767_v39 = vmul.f32 1.442695, %v2642_v61 }
 0x231   : > { %v769_v53 = vmul.f32 1.442695, %v2643_v57  ;;  %v771_v31 = vmul.f32 1.442695, %v2644_v15  ;;  %v773_v26 = vmul.f32 1.442695, %v2645_v25  ;;  %v2646_v55 = vsub.f32 %v1876_v35, %v2067_v1 }
 0x232   : > { %1360 = vpow2.f32 %v763_v33  ;;  %v777_v57 = vmul.f32 1.442695, %v2647_v28  ;;  %v2648_v30 = vsub.f32 %v1886_v40, %v2067_v1  ;;  %v2649_v32 = vsub.f32 %v1889_v42, %v2070_v5 }
 0x233   : > { %1362 = vpow2.f32 %v765_v47  ;;  %v775_v27 = vmul.f32 1.442695, %v2646_v55  ;;  %v2650_v35 = vsub.f32 %v1892_v44, %v2067_v1  ;;  %v2651_v38 = vsub.f32 %v1895_v46, %v2070_v5 }
 0x234   : > { %1364 = vpow2.f32 %v767_v39  ;;  %v779_v33 = vmul.f32 1.442695, %v2648_v30  ;;  %v781_v61 = vmul.f32 1.442695, %v2649_v32  ;;  %v2652_v40 = vsub.f32 %v1898_v48, %v2067_v1 }
 0x235   : > { %1366 = vpow2.f32 %v769_v53  ;;  %v783_v47 = vmul.f32 1.442695, %v2650_v35  ;;  %v785_v53 = vmul.f32 1.442695, %v2651_v38  ;;  %v2653_v42 = vsub.f32 %v1901_v50, %v2070_v5 }
 0x236   : > { %1368 = vpow2.f32 %v771_v31  ;;  %v787_v31 = vmul.f32 1.442695, %v2652_v40  ;;  %v2654_v44 = vsub.f32 %v1904_v52, %v2067_v1  ;;  %v2655_v25 = vsub.f32 %v1907_v54, %v2070_v5 }
 0x237   : > { %1370 = vpow2.f32 %v773_v26  ;;  %v789_v15 = vmul.f32 1.442695, %v2653_v42  ;;  %v2656_v55 = vsub.f32 %v1910_v56, %v2067_v1  ;;  %v2657_v28 = vsub.f32 %v1913_v58, %v2070_v5 }
 0x238   : > { %1372 = vpow2.f32 %v775_v27  ;;  %v791_v39 = vmul.f32 1.442695, %v2654_v44  ;;  %v793_v48 = vmul.f32 1.442695, %v2655_v25  ;;  %v2658_v30 = vsub.f32 %v1916_v60, %v2067_v1 }
 0x239   : > { %1374 = vpow2.f32 %v777_v57  ;;  %v795_v27 = vmul.f32 1.442695, %v2656_v55  ;;  %v797_v57 = vmul.f32 1.442695, %v2657_v28  ;;  %v2659_v32 = vsub.f32 %v1919_v62, %v2070_v5 }
 0x23a   : > { %1376 = vpow2.f32 %v779_v33  ;;  %v2241_v63 = vpop.eup %1358  ;;  %v799_v54 = vmul.f32 1.442695, %v2658_v30  ;;  %v2660_v35 = vsub.f32 %v1922_v0, %v2067_v1  ;;  %v2661_v38 = vsub.f32 %v1925_v2, %v2070_v5 }
 0x23b   : > { %1378 = vpow2.f32 %v781_v61  ;;  %v801_v56 = vmul.f32 1.442695, %v2659_v32  ;;  %v2662_v60 = vmov 0.0   ;;  %v2663_v62 = vsub.f32 %v1928_v4, %v2067_v1 }
 0x23c   : > { %v1361_v19 = vpop.eup %1360  ;;  %1380 = vpow2.f32 %v783_v47  ;;  %v803_v58 = vmul.f32 1.442695, %v2660_v35  ;;  %v1077_v40 = vcombine.high %v2662_v60, %v2662_v60  ;;  %v2664_v0 = vsub.f32 %v1931_v6, %v2070_v5 }
 0x23d   : > { %v1363_v46 = vpop.eup %1362  ;;  %1382 = vpow2.f32 %v785_v53  ;;  %v805_v53 = vmul.f32 1.442695, %v2661_v38  ;;  %v807_v42 = vmul.f32 1.442695, %v2663_v62  ;;  %v2665_v44 = vsub.f32 %v1934_v8, %v2067_v1 }
 0x23e   : > { %v1365_v26 = vpop.eup %1364  ;;  %1384 = vpow2.f32 %v787_v31  ;;  %v2666_v25 = vsub.f32 %v1937_v10, %v2070_v5  ;;  %v2667_v55 = vsub.f32 %v1940_v12, %v2067_v1 }
 0x23f   : > { %v1367_v50 = vpop.eup %1366  ;;  %1386 = vpow2.f32 %v789_v15  ;;  %v809_v15 = vmul.f32 1.442695, %v2664_v0  ;;  %v893_v4 = vadd.f32 %v1365_v26, %v1361_v19  ;;  %v991_v30 = vpack.c.bf16 %v1365_v26, %v1361_v19 }
 0x240   : > { %v2258_v52 = vpop.eup %1368  ;;  %1388 = vpow2.f32 %v791_v39  ;;  %v811_v39 = vmul.f32 1.442695, %v2665_v44  ;;  %v992_v6 = vpack.c.bf16 %v1367_v50, %v1363_v46  ;;  %v2668_v19 = vsub.f32 %v1943_v14, %v2070_v5 }
 0x241   : > { %v1371_v33 = vpop.eup %1370  ;;  %1390 = vpow2.f32 %v793_v48  ;;  %v813_v48 = vmul.f32 1.442695, %v2666_v25  ;;  %v894_v8 = vadd.f32 %v2258_v52, %v893_v4  ;;  %v2669_v26 = vsub.f32 %v1946_v16, %v2067_v1 }
 0x242   : > { %v1373_v61 = vpop.eup %1372  ;;  %1392 = vpow2.f32 %v795_v27  ;;  %v815_v27 = vmul.f32 1.442695, %v2667_v55  ;;  %1023 = vmatprep.subr.bf16.mxu1 %v992_v6  ;;  %v2671_v14 = vsub.f32 %v1952_v20, %v2067_v1 }
 0x243   : > { %v1375_v47 = vpop.eup %1374  ;;  %1394 = vpow2.f32 %v797_v57  ;;  %v930_v57 = vadd.f32 %v1367_v50, %v1363_v46  ;;  %v817_v46 = vmul.f32 1.442695, %v2668_v19  ;;  %v819_v50 = vmul.f32 1.442695, %v2669_v26  ;;  %1024 = vmatpush1.bf16.msra.mxu1 %v991_v30 }
 0x244   : > { %v2274_v31 = vpop.eup %1376  ;;  %1396 = vpow2.f32 %v799_v54  ;;  %v994_v32 = vpack.c.bf16 %v1375_v47, %v1371_v33  ;;  %v823_v16 = vmul.f32 1.442695, %v2671_v14  ;;  %v2677_v19 = vsub.f32 %v1970_v45, %v2067_v1 }
 0x245   : > { %v1379_v2 = vpop.eup %1378  ;;  %1398 = vpow2.f32 %v801_v56  ;;  %v993_v56 = vpack.c.bf16 %v1373_v61, %v2258_v52  ;;  %v931_v10 = vadd.f32 %v1371_v33, %v930_v57  ;;  %v2670_v33 = vsub.f32 %v1949_v18, %v2070_v5 }
 0x246   : > { %v1381_v28 = vpop.eup %1380  ;;  %1400 = vpow2.f32 %v803_v58  ;;  %v895_v58 = vadd.f32 %v1373_v61, %v894_v8  ;;  %1025 = vmatprep.subr.bf16.mxu1 %v994_v32  ;;  %v2675_v8 = vsub.f32 %v1964_v37, %v2067_v1 }
 0x247   : > { %v1383_v54 = vpop.eup %1382  ;;  %1402 = vpow2.f32 %v805_v53  ;;  %v995_v38 = vpack.c.bf16 %v1381_v28, %v2274_v31  ;;  %v821_v53 = vmul.f32 1.442695, %v2670_v33  ;;  %v932_v62 = vadd.f32 %v1375_v47, %v931_v10  ;;  %1026 = vmatpush1.bf16.msra.mxu1 %v993_v56 }
 0x248   : > { %v2293_v35 = vpop.eup %1384  ;;  %1404 = vpow2.f32 %v807_v42  ;;  %v996_v12 = vpack.c.bf16 %v1383_v54, %v1379_v2  ;;  %v1073_v42 = vrot.slane %v2241_v63, %v2064_v7  ;;  %v896_v61 = vadd.f32 %v2274_v31, %v895_v58 }
 0x249   : > { %v1387_v60 = vpop.eup %1386  ;;  %1406 = vpow2.f32 %v809_v15  ;;  %v933_v18 = vadd.f32 %v1379_v2, %v932_v62  ;;  %v2673_v31 = vsub.f32 %v1958_v24, %v2067_v1  ;;  %v831_v24 = vmul.f32 1.442695, %v2675_v8 }
 0x24a   : > { %v1389_v52 = vpop.eup %1388  ;;  %1408 = vpow2.f32 %v811_v39  ;;  %v2314_v47 = vmul.f32 %v1077_v40, %v1073_v42  ;;  %v897_v4 = vadd.f32 %v1381_v28, %v896_v61  ;;  %1027 = vmatprep.subr.bf16.mxu1 %v996_v12  ;;  %v2674_v40 = vsub.f32 %v1961_v34, %v2070_v5 }
 0x24b   : > { %v1391_v0 = vpop.eup %1390  ;;  %1410 = vpow2.f32 %v813_v48  ;;  %v997_v15 = vpack.c.bf16 %v1389_v52, %v2293_v35  ;;  %v2672_v48 = vsub.f32 %v1955_v22, %v2070_v5  ;;  %v827_v57 = vmul.f32 1.442695, %v2673_v31  ;;  %1028 = vmatpush1.bf16.msra.mxu1 %v995_v38 }
 0x24c   : > { %v2312_v44 = vpop.eup %1392  ;;  %1412 = vpow2.f32 %v815_v27  ;;  %v998_v39 = vpack.c.bf16 %v1391_v0, %v1387_v60  ;;  %v934_v6 = vadd.f32 %v1383_v54, %v933_v18  ;;  %v829_v27 = vmul.f32 1.442695, %v2674_v40 }
 0x24d   : > { %v1395_v25 = vpop.eup %1394  ;;  %1414 = vpow2.f32 %v817_v46  ;;  %v825_v55 = vmul.f32 1.442695, %v2672_v48  ;;  %v898_v30 = vadd.f32 %v2293_v35, %v897_v4  ;;  %v2676_v10 = vsub.f32 %v1967_v41, %v2070_v5 }
 0x24e   : > { %v1397_v20 = vpop.eup %1396  ;;  %1416 = vpow2.f32 %v819_v50  ;;  %v935_v32 = vadd.f32 %v1387_v60, %v934_v6  ;;  %v835_v46 = vmul.f32 1.442695, %v2677_v19  ;;  %1029 = vmatprep.subr.bf16.mxu1 %v998_v39  ;;  %v2678_v60 = vsub.f32 %v1973_v49, %v2070_v5 }
 0x24f   : > { %v1399_v2 = vpop.eup %1398  ;;  %1418 = vpow2.f32 %v821_v53  ;;  %v999_v22 = vpack.c.bf16 %v1397_v20, %v2312_v44  ;;  %v833_v34 = vmul.f32 1.442695, %v2676_v10  ;;  %v899_v12 = vadd.f32 %v1389_v52, %v898_v30  ;;  %1030 = vmatpush1.bf16.msra.mxu1 %v997_v15  ;;  %v2686_v30 = vld [vmem:[#allocation24_spill] sm:$0xff] }
 0x250   : > { %v2327_v28 = vpop.eup %1400  ;;  %1420 = vpow2.f32 %v823_v16  ;;  %v1000_v54 = vpack.c.bf16 %v1399_v2, %v1395_v25  ;;  %v936_v26 = vadd.f32 %v1391_v0, %v935_v32  ;;  %v837_v50 = vmul.f32 1.442695, %v2678_v60 }
 0x251   : > { %v1403_v56 = vpop.eup %1402  ;;  %1422 = vpow2.f32 %v825_v55  ;;  %v900_v58 = vadd.f32 %v2312_v44, %v899_v12  ;;  %v2679_v38 = vsub.f32 %v2615_v17, %v2067_v1  ;;  %v2680_v42 = vsub.f32 %v2616_v51, %v2070_v5  ;;  %v2690_v12 = vld [vmem:[#allocation26_spill] sm:$0xff] }
 0x252   : > { %v1405_v35 = vpop.eup %1404  ;;  %1424 = vpow2.f32 %v827_v57  ;;  %v937_v33 = vadd.f32 %v1395_v25, %v936_v26  ;;  %v2681_v16 = vsub.f32 %v2617_v3, %v2067_v1  ;;  %1031 = vmatprep.subr.bf16.mxu1 %v1000_v54  ;;  %v2682_v18 = vsub.f32 %v2618_v11, %v2070_v5 }
 0x253   : > { %v1407_v37 = vpop.eup %1406  ;;  %1426 = vpow2.f32 %v829_v27  ;;  %v1001_v41 = vpack.c.bf16 %v1405_v35, %v2327_v28  ;;  %v839_v45 = vmul.f32 1.442695, %v2679_v38  ;;  %v841_v49 = vmul.f32 1.442695, %v2680_v42  ;;  %1032 = vmatpush1.bf16.msra.mxu1 %v999_v22  ;;  %v2688_v22 = vld [vmem:[#allocation25_spill] sm:$0xff]  ;;  %v2694_v38 = vld [vmem:[#allocation28_spill] sm:$0xff] }
 0x254   : > { %v2343_v52 = vpop.eup %1408  ;;  %1428 = vpow2.f32 %v831_v24  ;;  %v1002_v53 = vpack.c.bf16 %v1407_v37, %v1403_v56  ;;  %v901_v0 = vadd.f32 %v1397_v20, %v900_v58  ;;  %v843_v61 = vmul.f32 1.442695, %v2681_v16 }
 0x255   : > { %v1411_v62 = vpop.eup %1410  ;;  %1430 = vpow2.f32 %v833_v34  ;;  %v938_v44 = vadd.f32 %v1399_v2, %v937_v33  ;;  %v845_v39 = vmul.f32 1.442695, %v2682_v18  ;;  %v2683_v15 = vsub.f32 %v2619_v29, %v2067_v1 }
 0x256   : > { %v1413_v14 = vpop.eup %1412  ;;  %1432 = vpow2.f32 %v835_v46  ;;  %v902_v25 = vadd.f32 %v2327_v28, %v901_v0  ;;  %v2684_v31 = vsub.f32 %v2620_v21, %v2070_v5  ;;  %v2685_v2 = vsub.f32 %v2621_v9, %v2067_v1  ;;  %1033 = vmatprep.subr.bf16.mxu1 %v1002_v53 }
 0x257   : > { %v1415_v17 = vpop.eup %1414  ;;  %1434 = vpow2.f32 %v837_v50  ;;  %v1003_v51 = vpack.c.bf16 %v1413_v14, %v2343_v52  ;;  %v847_v3 = vmul.f32 1.442695, %v2683_v15  ;;  %v939_v55 = vadd.f32 %v1403_v56, %v938_v44  ;;  %1034 = vmatpush1.bf16.msra.mxu1 %v1001_v41  ;;  %v2696_v41 = vld [vmem:[#allocation29_spill] sm:$0xff]  ;;  %v2698_v44 = vld [vmem:[#allocation30_spill] sm:$0xff] }
 0x258   : > { %v2359_v48 = vpop.eup %1416  ;;  %1436 = vpow2.f32 %v839_v45  ;;  %v1004_v4 = vpack.c.bf16 %v1415_v17, %v1411_v62  ;;  %v849_v11 = vmul.f32 1.442695, %v2684_v31  ;;  %v903_v57 = vadd.f32 %v1405_v35, %v902_v25 }
 0x259   : > { %v1419_v20 = vpop.eup %1418  ;;  %1438 = vpow2.f32 %v841_v49  ;;  %v851_v40 = vmul.f32 1.442695, %v2685_v2  ;;  %v940_v27 = vadd.f32 %v1407_v37, %v939_v55  ;;  %v2687_v28 = vsub.f32 %v2686_v30, %v2070_v5  ;;  %v2692_v37 = vld [vmem:[#allocation27_spill] sm:$0xff] }
 0x25a   : > { %v1421_v6 = vpop.eup %1420  ;;  %1440 = vpow2.f32 %v843_v61  ;;  %v904_v24 = vadd.f32 %v2343_v52, %v903_v57  ;;  %v2689_v54 = vsub.f32 %v2688_v22, %v2067_v1  ;;  %v2691_v35 = vsub.f32 %v2690_v12, %v2070_v5  ;;  %1035 = vmatprep.subr.bf16.mxu1 %v1004_v4 }
 0x25b   : > { %v1423_v29 = vpop.eup %1422  ;;  %1442 = vpow2.f32 %v845_v39  ;;  %v853_v8 = vmul.f32 1.442695, %v2687_v28  ;;  %v1005_v21 = vpack.c.bf16 %v1421_v6, %v2359_v48  ;;  %v941_v56 = vadd.f32 %v1411_v62, %v940_v27  ;;  %1036 = vmatpush1.bf16.msra.mxu1 %v1003_v51  ;;  %v2704_v51 = vld [vmem:[#allocation33_spill] sm:$0xff] }
 0x25c   : > { %v2375_v32 = vpop.eup %1424  ;;  %1444 = vpow2.f32 %v847_v3  ;;  %v855_v9 = vmul.f32 1.442695, %v2689_v54  ;;  %v1006_v10 = vpack.c.bf16 %v1423_v29, %v1419_v20  ;;  %v857_v19 = vmul.f32 1.442695, %v2691_v35 }
 0x25d   : > { %v1427_v34 = vpop.eup %1426  ;;  %1446 = vpow2.f32 %v849_v11  ;;  %v905_v46 = vadd.f32 %v1413_v14, %v904_v24  ;;  %v2693_v60 = vsub.f32 %v2692_v37, %v2067_v1  ;;  %v942_v58 = vadd.f32 %v1415_v17, %v941_v56 }
 0x25e   : > { %v1429_v26 = vpop.eup %1428  ;;  %1448 = vpow2.f32 %v851_v40  ;;  %v2695_v45 = vsub.f32 %v2694_v38, %v2070_v5  ;;  %v2697_v49 = vsub.f32 %v2696_v41, %v2067_v1  ;;  %v2699_v17 = vsub.f32 %v2698_v44, %v2070_v5  ;;  %1037 = vmatprep.subr.bf16.mxu1 %v1006_v10 }
 0x25f   : > { %v859_v50 = vmul.f32 1.442695, %v2693_v60  ;;  %v1431_v52 = vpop.eup %1430  ;;  %1450 = vpow2.f32 %v853_v8  ;;  %v906_v53 = vadd.f32 %v2359_v48, %v905_v46  ;;  %v1007_v62 = vpack.c.bf16 %v1429_v26, %v2375_v32  ;;  %v2700_v48 = vld [vmem:[#allocation31_spill] sm:$0xff]  ;;  %v2706_v8 = vld [vmem:[#allocation34_spill] sm:$0xff]  ;;  %1038 = vmatpush1.bf16.msra.mxu1 %v1005_v21 }
 0x260   : > { %v861_v33 = vmul.f32 1.442695, %v2695_v45  ;;  %v2391_v42 = vpop.eup %1432  ;;  %1452 = vpow2.f32 %v855_v9  ;;  %v863_v0 = vmul.f32 1.442695, %v2697_v49  ;;  %v943_v14 = vadd.f32 %v1419_v20, %v942_v58  ;;  %v2702_v20 = vld [vmem:[#allocation32_spill] sm:$0xff] }
 0x261   : > { %v1008_v16 = vpack.c.bf16 %v1431_v52, %v1427_v34  ;;  %v1435_v61 = vpop.eup %1434  ;;  %1454 = vpow2.f32 %v857_v19  ;;  %v865_v18 = vmul.f32 1.442695, %v2699_v17  ;;  %v907_v39 = vadd.f32 %v1421_v6, %v906_v53  ;;  %v2713_v53 = vld [vmem:[#allocation39_spill] sm:$0xff] }
 0x262   : > { %v1437_v25 = vpop.eup %1436  ;;  %1456 = vpow2.f32 %v859_v50  ;;  %v2701_v15 = vsub.f32 %v2700_v48, %v2067_v1  ;;  %v944_v55 = vadd.f32 %v1423_v29, %v943_v14  ;;  %v2703_v31 = vsub.f32 %v2702_v20, %v2070_v5 }
 0x263   : > { %v1439_v4 = vpop.eup %1438  ;;  %1458 = vpow2.f32 %v861_v33  ;;  %v908_v57 = vadd.f32 %v2375_v32, %v907_v39  ;;  %v1009_v2 = vpack.c.bf16 %v1437_v25, %v2391_v42  ;;  %v2705_v40 = vsub.f32 %v2704_v51, %v2067_v1  ;;  %1039 = vmatprep.subr.bf16.mxu1 %v1008_v16 }
 0x264   : > { %v867_v3 = vmul.f32 1.442695, %v2701_v15  ;;  %v869_v11 = vmul.f32 1.442695, %v2703_v31  ;;  %v2407_v6 = vpop.eup %1440  ;;  %1460 = vpow2.f32 %v863_v0  ;;  %v945_v30 = vadd.f32 %v1427_v34, %v944_v55  ;;  %v2709_v34 = vld [vmem:[#allocation36_spill] sm:$0xff]  ;;  %1040 = vmatpush1.bf16.msra.mxu1 %v1007_v62 }
 0x265   : > { %v871_v27 = vmul.f32 1.442695, %v2705_v40  ;;  %v1010_v29 = vpack.c.bf16 %v1439_v4, %v1435_v61  ;;  %v1443_v28 = vpop.eup %1442  ;;  %1462 = vpow2.f32 %v865_v18  ;;  %v2707_v24 = vsub.f32 %v2706_v8, %v2070_v5 }
 0x266   : > { %v909_v54 = vadd.f32 %v1429_v26, %v908_v57  ;;  %v1445_v32 = vpop.eup %1444  ;;  %1464 = vpow2.f32 %v867_v3  ;;  %v2708_v9 = vsub.f32 %v2633_v13, %v2067_v1  ;;  %v946_v10 = vadd.f32 %v1431_v52, %v945_v30 }
 0x267   : > { %v873_v22 = vmul.f32 1.442695, %v2707_v24  ;;  %v1447_v12 = vpop.eup %1446  ;;  %1466 = vpow2.f32 %v869_v11  ;;  %v2710_v35 = vsub.f32 %v2709_v34, %v2070_v5  ;;  %v1011_v37 = vpack.c.bf16 %v1445_v32, %v2407_v6  ;;  %1041 = vmatprep.subr.bf16.mxu1 %v1010_v29 }
 0x268   : > { %v875_v56 = vmul.f32 1.442695, %v2708_v9  ;;  %v910_v46 = vadd.f32 %v2391_v42, %v909_v54  ;;  %v1449_v26 = vpop.eup %1448  ;;  %1468 = vpow2.f32 %v871_v27  ;;  %v2711_v21 = vsub.f32 %v2635_v59, %v2067_v1  ;;  %1042 = vmatpush1.bf16.msra.mxu1 %v1009_v2 }
 0x269   : > { %v877_v19 = vmul.f32 1.442695, %v2710_v35  ;;  %v947_v13 = vadd.f32 %v1435_v61, %v946_v10  ;;  %v1012_v50 = vpack.c.bf16 %v1447_v12, %v1443_v28  ;;  %v1451_v58 = vpop.eup %1450  ;;  %1470 = vpow2.f32 %v873_v22 }
 0x26a   : > { %v879_v60 = vmul.f32 1.442695, %v2711_v21  ;;  %v2712_v52 = vsub.f32 %v2636_v43, %v2070_v5  ;;  %v911_v45 = vadd.f32 %v1437_v25, %v910_v46  ;;  %v1453_v33 = vpop.eup %1452  ;;  %1472 = vpow2.f32 %v875_v56  ;;  %v2717_v25 = vld [vmem:[#allocation42_spill] sm:$0xff] }
 0x26b   : > { %v2714_v42 = vsub.f32 %v2713_v53, %v2067_v1  ;;  %v948_v49 = vadd.f32 %v1439_v4, %v947_v13  ;;  %v1455_v59 = vpop.eup %1454  ;;  %1474 = vpow2.f32 %v877_v19  ;;  %v2715_v0 = vsub.f32 %v2638_v36, %v2070_v5  ;;  %1043 = vmatprep.subr.bf16.mxu1 %v1012_v50 }
 0x26c   : > { %v881_v38 = vmul.f32 1.442695, %v2712_v52  ;;  %v912_v16 = vadd.f32 %v2407_v6, %v911_v45  ;;  %v1013_v43 = vpack.c.bf16 %v1453_v33, %v1449_v26  ;;  %v1457_v61 = vpop.eup %1456  ;;  %1476 = vpow2.f32 %v879_v60  ;;  %1044 = vmatpush1.bf16.msra.mxu1 %v1011_v37 }
 0x26d   : > { %v883_v41 = vmul.f32 1.442695, %v2714_v42  ;;  %v885_v14 = vmul.f32 1.442695, %v2715_v0  ;;  %v2716_v62 = vsub.f32 %v2639_v23, %v2067_v1  ;;  %v949_v17 = vadd.f32 %v1443_v28, %v948_v49  ;;  %v1459_v39 = vpop.eup %1458 }
 0x26e   : > { %v1014_v18 = vpack.c.bf16 %v1455_v59, %v1451_v58  ;;  %1478 = vpow2.f32 %v881_v38  ;;  %v2718_v48 = vsub.f32 %v2717_v25, %v2070_v5  ;;  %v913_v3 = vadd.f32 %v1445_v32, %v912_v16  ;;  %v1461_v36 = vpop.eup %1460  ;;  %v1490_v16 = vld.sshfl [vmem:[%s1831_s20] sm:$0x33 pattern:$0x76325410]  ;;  %v891_v25 = vld [vmem:[#allocation4] sm:$0x3] }
 0x26f   : > { %v887_v44 = vmul.f32 1.442695, %v2716_v62  ;;  %1480 = vpow2.f32 %v883_v41  ;;  %v950_v55 = vadd.f32 %v1447_v12, %v949_v17  ;;  %v1463_v4 = vpop.eup %1462  ;;  %v1015_v31 = vpack.c.bf16 %v1461_v36, %v1457_v61 }
 0x270   : > { %v889_v15 = vmul.f32 1.442695, %v2718_v48  ;;  %1482 = vpow2.f32 %v885_v14  ;;  %v914_v20 = vadd.f32 %v1449_v26, %v913_v3  ;;  %v1465_v1 = vpop.eup %1464  ;;  %v1016_v11 = vpack.c.bf16 %v1463_v4, %v1459_v39  ;;  %1045 = vmatprep.subr.bf16.mxu1 %v1014_v18  ;;  %v2719_v48 = vld [vmem:[#allocation43_spill] sm:$0xff] }
 0x271   : > { %1484 = vpow2.f32 %v887_v44  ;;  %v951_v23 = vadd.f32 %v1451_v58, %v950_v55  ;;  %v1467_v57 = vpop.eup %1466  ;;  %1046 = vmatpush1.bf16.msra.mxu1 %v1013_v43 }
 0x272   : > { %1486 = vpow2.f32 %v889_v15  ;;  %v915_v6 = vadd.f32 %v1453_v33, %v914_v20  ;;  %v1469_v5 = vpop.eup %1468  ;;  %1047 = vmatprep.subr.bf16.mxu1 %v1016_v11 }
 0x273   : > { %v952_v51 = vadd.f32 %v1455_v59, %v951_v23  ;;  %v1471_v2 = vpop.eup %1470  ;;  %v1017_v27 = vpack.c.bf16 %v1469_v5, %v1465_v1 }
 0x274   : > { %v916_v40 = vadd.f32 %v1457_v61, %v915_v6  ;;  %v1473_v30 = vpop.eup %1472  ;;  %v1018_v28 = vpack.c.bf16 %v1471_v2, %v1467_v57 }
 0x275   : > { %v953_v29 = vadd.f32 %v1459_v39, %v952_v51  ;;  %v1475_v8 = vpop.eup %1474  ;;  %1048 = vmatpush1.bf16.msra.mxu1 %v1015_v31  ;;  %v2721_v31 = vld [vmem:[#allocation44_spill] sm:$0xff] }
 0x276   : > { %v917_v24 = vadd.f32 %v1461_v36, %v916_v40  ;;  %v1477_v22 = vpop.eup %1476  ;;  %1049 = vmatprep.subr.bf16.mxu1 %v1018_v28  ;;  %v892_v36 = vmul.f32 %v2241_v63, %v891_v25  ;;  %v1108_v28 = vstv %s1094_s25 }
 0x277   : > { %v954_v54 = vadd.f32 %v1463_v4, %v953_v29  ;;  %v1019_v56 = vpack.c.bf16 %v1477_v22, %v1473_v30 }
 0x278   : > { %v1479_v32 = vpop.eup %1478  ;;  %v918_v9 = vadd.f32 %v1465_v1, %v917_v24  ;;  %v1069_v1 = vrot.slane %v2241_v63, %v2721_v31  ;;  %v1110_v24 = vld [vmem:[%s1823_s11] sm:$0xff] }
 0x279   : > { %v1481_v10 = vpop.eup %1480  ;;  %v955_v12 = vadd.f32 %v1467_v57, %v954_v54  ;;  %v1020_v34 = vpack.c.bf16 %v1479_v32, %v1475_v8  ;;  %1050 = vmatpush1.bf16.msra.mxu1 %v1017_v27 }
 0x27a   : > { %v1483_v35 = vpop.eup %1482  ;;  %v919_v19 = vadd.f32 %v1469_v5, %v918_v9  ;;  %v1079_v11 = vmul.f32 0.0, %v1069_v1 }
 0x27b   : > { %v1485_v46 = vpop.eup %1484  ;;  %v956_v37 = vadd.f32 %v1471_v2, %v955_v12  ;;  %1051 = vmatprep.subr.bf16.mxu1 %v1020_v34 }
 0x27c   : > { %v1487_v26 = vpop.eup %1486  ;;  %v920_v21 = vadd.f32 %v1473_v30, %v919_v19  ;;  %v1021_v60 = vpack.c.bf16 %v1485_v46, %v1481_v10 }
 0x27d   : > { %v957_v13 = vadd.f32 %v1475_v8, %v956_v37  ;;  %v1022_v50 = vpack.c.bf16 %v1487_v26, %v1483_v35  ;;  %1052 = vmatpush1.bf16.msra.mxu1 %v1019_v56 }
 0x27e   : > { %v921_v58 = vadd.f32 %v1477_v22, %v920_v21 }
 0x27f   : > { %v958_v52 = vadd.f32 %v1479_v32, %v957_v13  ;;  %1053 = vmatprep.subr.bf16.mxu1 %v1022_v50 }
 0x280   : > { %v922_v38 = vadd.f32 %v1481_v10, %v921_v58 }
 0x281   : > { %v959_v45 = vadd.f32 %v1483_v35, %v958_v52  ;;  %1054 = vmatpush1.bf16.msra.mxu1 %v1021_v60 }
 0x282   : > { %v923_v33 = vadd.f32 %v1485_v46, %v922_v38 }
 0x283   : > { %v960_v53 = vadd.f32 %v1487_v26, %v959_v45 }
 0x284   : > { %v924_v42 = vrot.slane %v923_v33, 4  ;;  %1056 = vmatmul.mubr.bf16.vlgmr.msra.gmra.mrb[0].mxu1 %v1490_v16 }
 0x285   : > { %v961_v41 = vrot.slane %v960_v53, 4 }
 0x286   : > { %v925_v49 = vadd.f32 %v924_v42, %v923_v33 }
 0x287   : > { %v962_v59 = vadd.f32 %v961_v41, %v960_v53 }
 0x288   : > { %v926_v0 = vrot.slane %v925_v49, 2 }
 0x289   : > { %v963_v14 = vrot.slane %v962_v59, 2 }
 0x28a   : > { %v927_v43 = vadd.f32 %v926_v0, %v925_v49 }
 0x28b   : > { %v964_v61 = vadd.f32 %v963_v14, %v962_v59 }
 0x28c   : > { %v928_v62 = vrot.slane %v927_v43, 1 }
 0x28d   : > { %v965_v44 = vrot.slane %v964_v61, 1 }
 0x28e   : > { %v929_v17 = vadd.f32 %v928_v62, %v927_v43 }
 0x28f   : > { %v966_v18 = vadd.f32 %v965_v44, %v964_v61 }
 0x291   : > { %v969_v39 = vcombine.low %v929_v17, %v966_v18 }
 0x293   : > { %v976_v15 = vrot.slane %v969_v39, %v2719_v48 }
 0x295   : > { %v983_v3 = vrot.slane %v976_v15, %v2719_v48 }
 0x297   : > { %v985_v55 = vadd.f32 %v983_v3, %v892_v36 }
 0x299   : > { %990 = vst.msk [vmem:[#allocation4] sm:$0x3] %vm1870_vm2, %v985_v55 }
 0x2a0   : > { %v1092_v20 = vld [vmem:[#allocation4] sm:$0x3] }
 0x2a1   : > { %1488 = vrcp.f32 %v1092_v20 }
 0x2ab   : > { %v1489_v23 = vpop.eup %1488 }
 0x2ac   : > { %v1100_v6 = vrot.slane %v1489_v23, %v2721_v31  ;;  %v1104_v5 = vrot.slane %v1489_v23, %v2064_v7 }
 0x2ae   : > { %v1105_v63 = vcombine.low %v1100_v6, %v1104_v5 }
 0x357   : > { %v1057_v57 = vpop.f32.mrb[0].mxu1 }
 0x358   : > { %v1081_v51 = vadd.f32 %v1079_v11, %v1057_v57  ;;  %v1059_v2 = vpop.f32.mrb[1].mxu1 }
 0x359   : > { %v1082_v40 = vadd.f32 %v2314_v47, %v1059_v2  ;;  %v1061_v27 = vpop.f32.mrb[2].mxu1 }
 0x35a   : > { %v1062_v30 = vpop.f32.mrb[3].mxu1 }
 0x35b   : > { %v1085_v29 = vcombine.low %v1081_v51, %v1082_v40 }
 0x35d   : > { %v1107_v8 = vmul.f32 %v1105_v63, %v1085_v29 }
 0x35f   : > { %v1109_v22 = vmul.f32 %v1108_v28, %v1107_v8 }
 0x361   : > { %v1111_v54 = vadd.f32 %v1110_v24, %v1109_v22 }
 0x363   : > { %1112 = vst [vmem:[%s254_s7] sm:$0xff] %v1111_v54 }
 0x364   : > { %1564 = shalt.err (!%p1561_p2)
}
 0x365   : > { %s1565_s0 = scalar_lea.hbm %s2460_s5, 128  ;;  %s1569_s11 = scalar_lea.hbm %s2512_s3, 256 }
 0x366   : > { %p1566_p9 = scmp.ne.s32.totalorder %s2460_s5, %s1565_s0  ;;  %p1570_p6 = scmp.lt.u32.totalorder %s2460_s5, %s2512_s3 }
 0x367   : > { %p1571_p13 = scmp.lt.u32.totalorder %s1569_s11, %s1565_s0  ;;  %p1573_p0 = scmp.lt.u32.totalorder %s1565_s0, %s2460_s5 }
 0x368   : > { %p1567_p11 = pnand %p1566_p9, %p2722_p5 }
 0x369   : > { %p1572_p8 = por %p1571_p13, %p1570_p6 }
 0x36a   : > { %p1568_p3 = pneg %p1567_p11 }
 0x36b   : > { %p1574_p7 = por %p1573_p0, %p1572_p8 }
 0x36d   : > { %p1575_p4 = pnand %p1574_p7, %p1568_p3 }
 0x36f   : > { %1578 = shalt.err (!%p1575_p4)
}
 0x370   : > { %1290 = dma.vmem_to_hbm [thread:$0]  (%p2722_p5), %s2462_s24, 128, %s2460_s5, %s1114_s29  }
 0x371 PF: > { %s1142_s20 = sand.u32 1, %s1617_s14   ;;  %p2723_p10 = scmp.ne.s32.totalorder %s2576_s28, 0 }
 0x372   : > { %p2724_p12 = scmp.ge.s32.totalorder %s1637_s19, 2  ;;  %s1143_s25 = scalar_lea.sflag [#allocation9], %s1142_s20 }
 0x374   : > { %p1300_p1 = pnand %p2724_p12, %p2723_p10 }
 0x376   : > { %1612 = dma.done.wait (!%p1300_p1), %s1143_s25, 128  }
 0x377   : > { %1614 = vsyncadd (!%p1300_p1), %s1143_s25, 4294967168  ;;  %s23_s19 = sadd.s32 1, %s1637_s19   ;;  %s2725_s14 = smov %s1621_s15 }
 0x378   : > { %p20_p2 = scmp.ge.s32.totalorder %s23_s19, 4   ;;  %s2726_s15 = smov %s1625_s16 }
 0x379   : > { %s2727_s16 = smov %s1725_s27  ;;  %s2728_s17 = smov %s1633_s18 }
 0x37a   : > { %s2729_s18 = smov %s2731_s21  ;;  %22 = sbr.rel (!%p20_p2) target bundleno = 10 (0xa), region = 98 }
 0x381   :  { %1148 = vsyncpa [#allocation8], 1 }
 0x382   :  { %1150 = vsyncpa [#allocation8 + $0x1], 1 }
 0x383   :  { %1151 = vsyncpa [#allocation11], 1 }
 0x384   :  { %1153 = vsyncpa [#allocation11 + $0x1], 1 }
 0x385   :  { %1154 = vsyncpa [#allocation9], 1 }
 0x386   :  { %1156 = vsyncpa [#allocation9 + $0x1], 1 }

</bundles_post_ra>
